<compile_context>
chip_gen: v7x
topology: tpu7x:2x2x1
jax: 0.10.0
libtpu: 0.0.40
codegen_flags: <defaults>
</compile_context>

<pallas_src>
import jax
import jax.numpy as jnp
from jax import lax
from jax.experimental import pallas as pl
from jax.experimental.pallas import tpu as pltpu

# ---- problem sizes (small, consistent with the module) ----
T = 8          # seq_len
B = 2          # batch
B_PAD = 8      # batch padded to one full sublane tile (aligned xw slices)
I = 2          # input_size (fixed by nn.LSTM(2, hidden))
H = 32         # args.hidden_size


def lstm_kernel(x_ref, wih_ref, whh_ref, b_ref, wlin_ref, blin_ref, out_ref):
    """Full LSTM recurrence + final linear head.

    x_ref    : (T*B_PAD, I)  f32 VMEM  (time-major rows: row t*B_PAD + b == x[t, b],
                                        rows b >= B are zero padding)
    wih_ref  : (I, 4H)       f32 VMEM  (W_ih transposed)
    whh_ref  : (H, 4H)       f32 VMEM  (W_hh transposed)
    b_ref    : (1, 4H)       f32 VMEM  (b_ih + b_hh)
    wlin_ref : (1, H)        f32 VMEM  (linear weight as a row)
    blin_ref : (1, 1)        f32 VMEM
    out_ref  : (B_PAD, 1)    f32 VMEM  (only first B rows are meaningful)
    """
    whh = whh_ref[...]  # (H, 4H), reused every step

    # Hoisted input projection + bias: one MXU pass over all timesteps.
    xw = (
        jnp.dot(x_ref[...], wih_ref[...], preferred_element_type=jnp.float32)
        + b_ref[...]
    )  # (T*B_PAD, 4H)

    # Hoisted constant vectors (kept above the unrolled loop on purpose).
    lane = lax.broadcasted_iota(jnp.int32, (B_PAD, 4 * H), 1)
    g_lanes = (lane >= 2 * H) & (lane < 3 * H)
    scale = jnp.where(g_lanes, 2.0, 1.0).astype(jnp.float32)   # x2 on g lanes
    two = jnp.full((B_PAD, H), 2.0, jnp.float32)
    one = jnp.full((B_PAD, H), 1.0, jnp.float32)

    def gate_math(gates):
        # One sigmoid over the whole (B_PAD, 4H) vreg (single EUP push);
        # tanh(g) recovered as 2*sigmoid(2g) - 1 with VPU ops.
        sig = jax.nn.sigmoid(gates * scale)
        i_g = sig[:, 0 * H:1 * H]
        f_g = sig[:, 1 * H:2 * H]
        g_g = two * sig[:, 2 * H:3 * H] - one
        o_g = sig[:, 3 * H:4 * H]
        return i_g, f_g, g_g, o_g

    # ---- peeled t = 0: h0 = c0 = 0, so gates == xw[0:B_PAD] exactly ----
    i_g, _, g_g, o_g = gate_math(xw[0:B_PAD, :])
    c = i_g * g_g
    h = o_g * jnp.tanh(c)

    # ---- t = 1 .. T-1, fully unrolled, sublane-aligned xw slices ----
    for t in range(1, T):
        gates = (
            jnp.dot(h, whh, preferred_element_type=jnp.float32)
            + xw[t * B_PAD:(t + 1) * B_PAD, :]
        )  # (B_PAD, 4H)
        i_g, f_g, g_g, o_g = gate_math(gates)
        c = f_g * c + i_g * g_g
        h = o_g * jnp.tanh(c)
    # TODO(synk): hold W_hh resident in the MXU across the unrolled steps via
    # pltpu.matmul_push_rhs / matmul_acc_lhs / matmul_pop (drops the per-step
    # weight re-stream) once the per-step pop/reset semantics are validated.

    # Final Linear(H, 1): broadcast-multiply + lane reduction
    # (avoids an MXU push/drain for a 1-lane result).
    out_ref[...] = (
        jnp.sum(h * wlin_ref[...], axis=-1, keepdims=True) + blin_ref[...]
    )


def lstm_forward(x, w_ih, w_hh, b_ih, b_hh, w_lin, b_lin):
    """x: (T, B, I).  Returns (B,) — matches `self.lin(x[-1]).squeeze(1)`."""
    wih_t = w_ih.T                       # (I, 4H)
    whh_t = w_hh.T                       # (H, 4H)
    b = (b_ih + b_hh).reshape(1, 4 * H)  # (1, 4H)
    wlin = w_lin.reshape(1, H)           # (1, H)
    blin = b_lin.reshape(1, 1)           # (1, 1)

    # Zero-pad batch 2 -> 8 so per-step slices inside the kernel are whole
    # sublane tiles.  Padded rows run an independent (harmless) recurrence.
    x_pad = jnp.zeros((T, B_PAD, I), jnp.float32).at[:, :B, :].set(x)
    x_flat = x_pad.reshape(T * B_PAD, I)

    vmem_specs = [
        pl.BlockSpec(memory_space=pltpu.MemorySpace.VMEM) for _ in range(6)
    ]
    out = pl.pallas_call(
        lstm_kernel,
        out_shape=jax.ShapeDtypeStruct((B_PAD, 1), jnp.float32),
        in_specs=vmem_specs,
        out_specs=pl.BlockSpec(memory_space=pltpu.MemorySpace.VMEM),
    )(x_flat, wih_t, whh_t, b, wlin, blin)
    return out[:B, 0]  # keep only real batch rows; squeeze(1)
    # TODO(synk): for many independent sequences, pack them into the batch
    # (sublane) dimension of this same kernel (128-512 rows) to amortize the
    # per-step weight load / EUP pushes; only then add a leading "parallel"
    # grid axis over sequence blocks (v7x: 2 TCs, 64 MiB VMEM per TC).


def lstm_reference(x, w_ih, w_hh, b_ih, b_hh, w_lin, b_lin):
    """Pure-JAX reference mirroring torch.nn.LSTM + Linear."""
    def step(carry, x_t):
        h, c = carry
        gates = x_t @ w_ih.T + h @ w_hh.T + b_ih + b_hh
        i_g = jax.nn.sigmoid(gates[:, 0 * H:1 * H])
        f_g = jax.nn.sigmoid(gates[:, 1 * H:2 * H])
        g_g = jnp.tanh(gates[:, 2 * H:3 * H])
        o_g = jax.nn.sigmoid(gates[:, 3 * H:4 * H])
        c_new = f_g * c + i_g * g_g
        h_new = o_g * jnp.tanh(c_new)
        return (h_new, c_new), h_new

    h0 = jnp.zeros((B, H), jnp.float32)
    c0 = jnp.zeros((B, H), jnp.float32)
    (h_last, _), _ = lax.scan(step, (h0, c0), x)
    return (h_last @ w_lin.T + b_lin)[:, 0]


if __name__ == "__main__":
    key = jax.random.PRNGKey(0)
    ks = jax.random.split(key, 7)
    k = 1.0 / jnp.sqrt(jnp.float32(H))

    # Deterministic parameter init (PyTorch-style U(-1/sqrt(H), 1/sqrt(H))).
    x = jax.random.normal(ks[0], (T, B, I), dtype=jnp.float32)
    w_ih = jax.random.uniform(ks[1], (4 * H, I), jnp.float32, -k, k)
    w_hh = jax.random.uniform(ks[2], (4 * H, H), jnp.float32, -k, k)
    b_ih = jax.random.uniform(ks[3], (4 * H,), jnp.float32, -k, k)
    b_hh = jax.random.uniform(ks[4], (4 * H,), jnp.float32, -k, k)
    w_lin = jax.random.uniform(ks[5], (1, H), jnp.float32, -k, k)
    b_lin = jax.random.uniform(ks[6], (1,), jnp.float32, -k, k)

    out = lstm_forward(x, w_ih, w_hh, b_ih, b_hh, w_lin, b_lin)
    jax.block_until_ready(out)

    ref = lstm_reference(x, w_ih, w_hh, b_ih, b_hh, w_lin, b_lin)
    assert out.shape == (B,)
    assert jnp.allclose(out, ref, atol=1e-5, rtol=1e-5), (out, ref)

    print("KERNEL_OK")
</pallas_src>

<mosaic_0001>
module attributes {stable_mosaic.version = 11 : i64} {
  func.func @lstm_kernel(%arg0: memref<64x2xf32, #tpu.memory_space<vmem>>, %arg1: memref<2x128xf32, #tpu.memory_space<vmem>>, %arg2: memref<32x128xf32, #tpu.memory_space<vmem>>, %arg3: memref<1x128xf32, #tpu.memory_space<vmem>>, %arg4: memref<1x32xf32, #tpu.memory_space<vmem>>, %arg5: memref<1x1xf32, #tpu.memory_space<vmem>>, %arg6: memref<8x1xf32, #tpu.memory_space<vmem>>) attributes {dimension_semantics = [], scalar_prefetch = 0 : i64, scratch_operands = 0 : i64, tpu.core_type = #tpu.core_type<tc>} {
    %c0 = arith.constant 0 : index
    %c0_0 = arith.constant 0 : index
    %0 = vector.load %arg2[%c0, %c0_0] : memref<32x128xf32, #tpu.memory_space<vmem>>, vector<32x128xf32>
    %c0_1 = arith.constant 0 : index
    %c0_2 = arith.constant 0 : index
    %1 = vector.load %arg0[%c0_1, %c0_2] : memref<64x2xf32, #tpu.memory_space<vmem>>, vector<64x2xf32>
    %c0_3 = arith.constant 0 : index
    %c0_4 = arith.constant 0 : index
    %2 = vector.load %arg1[%c0_3, %c0_4] : memref<2x128xf32, #tpu.memory_space<vmem>>, vector<2x128xf32>
    %cst = arith.constant dense<0.000000e+00> : vector<64x128xf32>
    %3 = tpu.matmul %1, %2, %cst {dimension_numbers = #tpu.dot_dimension_numbers<[1], [0], [0], [1], [0, 0, 1, 1], [], []>} : vector<64x2xf32>, vector<2x128xf32>, vector<64x128xf32> -> vector<64x128xf32>
    %c0_5 = arith.constant 0 : index
    %c0_6 = arith.constant 0 : index
    %4 = vector.load %arg3[%c0_5, %c0_6] : memref<1x128xf32, #tpu.memory_space<vmem>>, vector<1x128xf32>
    %5 = vector.broadcast %4 : vector<1x128xf32> to vector<64x128xf32>
    %6 = arith.addf %3, %5 : vector<64x128xf32>
    %7 = tpu.iota {dimensions = array<i32: 1>} : vector<8x128xi32>
    %c64_i32 = arith.constant 64 : i32
    %8 = vector.broadcast %c64_i32 : i32 to vector<8x128xi32>
    %9 = arith.cmpi sge, %7, %8 : vector<8x128xi32>
    %c96_i32 = arith.constant 96 : i32
    %10 = vector.broadcast %c96_i32 : i32 to vector<8x128xi32>
    %11 = arith.cmpi slt, %7, %10 : vector<8x128xi32>
    %12 = arith.andi %9, %11 : vector<8x128xi1>
    %cst_7 = arith.constant 2.000000e+00 : f32
    %cst_8 = arith.constant 1.000000e+00 : f32
    %13 = vector.broadcast %cst_7 : f32 to vector<8x128xf32>
    %14 = vector.broadcast %cst_8 : f32 to vector<8x128xf32>
    %15 = arith.select %12, %13, %14 : vector<8x128xi1>, vector<8x128xf32>
    %cst_9 = arith.constant 2.000000e+00 : f32
    %16 = vector.broadcast %cst_9 : f32 to vector<8x32xf32>
    %cst_10 = arith.constant 1.000000e+00 : f32
    %17 = vector.broadcast %cst_10 : f32 to vector<8x32xf32>
    %18 = vector.extract_strided_slice %6 {offsets = [0, 0], sizes = [8, 128], strides = [1, 1]} : vector<64x128xf32> to vector<8x128xf32>
    %19 = arith.mulf %18, %15 : vector<8x128xf32>
    %20 = arith.negf %19 : vector<8x128xf32>
    %21 = math.exp %20 : vector<8x128xf32>
    %cst_11 = arith.constant 1.000000e+00 : f32
    %22 = vector.broadcast %cst_11 : f32 to vector<8x128xf32>
    %23 = arith.addf %22, %21 : vector<8x128xf32>
    %24 = arith.divf %22, %23 : vector<8x128xf32>
    %25 = vector.extract_strided_slice %24 {offsets = [0, 0], sizes = [8, 32], strides = [1, 1]} : vector<8x128xf32> to vector<8x32xf32>
    %26 = vector.extract_strided_slice %24 {offsets = [0, 64], sizes = [8, 32], strides = [1, 1]} : vector<8x128xf32> to vector<8x32xf32>
    %27 = arith.mulf %16, %26 : vector<8x32xf32>
    %28 = arith.subf %27, %17 : vector<8x32xf32>
    %29 = vector.extract_strided_slice %24 {offsets = [0, 96], sizes = [8, 32], strides = [1, 1]} : vector<8x128xf32> to vector<8x32xf32>
    %30 = arith.mulf %25, %28 : vector<8x32xf32>
    %31 = math.tanh %30 : vector<8x32xf32>
    %32 = arith.mulf %29, %31 : vector<8x32xf32>
    %cst_12 = arith.constant dense<0.000000e+00> : vector<8x128xf32>
    %33 = tpu.matmul %32, %0, %cst_12 {dimension_numbers = #tpu.dot_dimension_numbers<[1], [0], [0], [1], [0, 0, 1, 1], [], []>} : vector<8x32xf32>, vector<32x128xf32>, vector<8x128xf32> -> vector<8x128xf32>
    %34 = vector.extract_strided_slice %6 {offsets = [8, 0], sizes = [8, 128], strides = [1, 1]} : vector<64x128xf32> to vector<8x128xf32>
    %35 = arith.addf %33, %34 : vector<8x128xf32>
    %36 = arith.mulf %35, %15 : vector<8x128xf32>
    %37 = arith.negf %36 : vector<8x128xf32>
    %38 = math.exp %37 : vector<8x128xf32>
    %cst_13 = arith.constant 1.000000e+00 : f32
    %39 = vector.broadcast %cst_13 : f32 to vector<8x128xf32>
    %40 = arith.addf %39, %38 : vector<8x128xf32>
    %41 = arith.divf %39, %40 : vector<8x128xf32>
    %42 = vector.extract_strided_slice %41 {offsets = [0, 0], sizes = [8, 32], strides = [1, 1]} : vector<8x128xf32> to vector<8x32xf32>
    %43 = vector.extract_strided_slice %41 {offsets = [0, 32], sizes = [8, 32], strides = [1, 1]} : vector<8x128xf32> to vector<8x32xf32>
    %44 = vector.extract_strided_slice %41 {offsets = [0, 64], sizes = [8, 32], strides = [1, 1]} : vector<8x128xf32> to vector<8x32xf32>
    %45 = arith.mulf %16, %44 : vector<8x32xf32>
    %46 = arith.subf %45, %17 : vector<8x32xf32>
    %47 = vector.extract_strided_slice %41 {offsets = [0, 96], sizes = [8, 32], strides = [1, 1]} : vector<8x128xf32> to vector<8x32xf32>
    %48 = arith.mulf %43, %30 : vector<8x32xf32>
    %49 = arith.mulf %42, %46 : vector<8x32xf32>
    %50 = arith.addf %48, %49 : vector<8x32xf32>
    %51 = math.tanh %50 : vector<8x32xf32>
    %52 = arith.mulf %47, %51 : vector<8x32xf32>
    %cst_14 = arith.constant dense<0.000000e+00> : vector<8x128xf32>
    %53 = tpu.matmul %52, %0, %cst_14 {dimension_numbers = #tpu.dot_dimension_numbers<[1], [0], [0], [1], [0, 0, 1, 1], [], []>} : vector<8x32xf32>, vector<32x128xf32>, vector<8x128xf32> -> vector<8x128xf32>
    %54 = vector.extract_strided_slice %6 {offsets = [16, 0], sizes = [8, 128], strides = [1, 1]} : vector<64x128xf32> to vector<8x128xf32>
    %55 = arith.addf %53, %54 : vector<8x128xf32>
    %56 = arith.mulf %55, %15 : vector<8x128xf32>
    %57 = arith.negf %56 : vector<8x128xf32>
    %58 = math.exp %57 : vector<8x128xf32>
    %cst_15 = arith.constant 1.000000e+00 : f32
    %59 = vector.broadcast %cst_15 : f32 to vector<8x128xf32>
    %60 = arith.addf %59, %58 : vector<8x128xf32>
    %61 = arith.divf %59, %60 : vector<8x128xf32>
    %62 = vector.extract_strided_slice %61 {offsets = [0, 0], sizes = [8, 32], strides = [1, 1]} : vector<8x128xf32> to vector<8x32xf32>
    %63 = vector.extract_strided_slice %61 {offsets = [0, 32], sizes = [8, 32], strides = [1, 1]} : vector<8x128xf32> to vector<8x32xf32>
    %64 = vector.extract_strided_slice %61 {offsets = [0, 64], sizes = [8, 32], strides = [1, 1]} : vector<8x128xf32> to vector<8x32xf32>
    %65 = arith.mulf %16, %64 : vector<8x32xf32>
    %66 = arith.subf %65, %17 : vector<8x32xf32>
    %67 = vector.extract_strided_slice %61 {offsets = [0, 96], sizes = [8, 32], strides = [1, 1]} : vector<8x128xf32> to vector<8x32xf32>
    %68 = arith.mulf %63, %50 : vector<8x32xf32>
    %69 = arith.mulf %62, %66 : vector<8x32xf32>
    %70 = arith.addf %68, %69 : vector<8x32xf32>
    %71 = math.tanh %70 : vector<8x32xf32>
    %72 = arith.mulf %67, %71 : vector<8x32xf32>
    %cst_16 = arith.constant dense<0.000000e+00> : vector<8x128xf32>
    %73 = tpu.matmul %72, %0, %cst_16 {dimension_numbers = #tpu.dot_dimension_numbers<[1], [0], [0], [1], [0, 0, 1, 1], [], []>} : vector<8x32xf32>, vector<32x128xf32>, vector<8x128xf32> -> vector<8x128xf32>
    %74 = vector.extract_strided_slice %6 {offsets = [24, 0], sizes = [8, 128], strides = [1, 1]} : vector<64x128xf32> to vector<8x128xf32>
    %75 = arith.addf %73, %74 : vector<8x128xf32>
    %76 = arith.mulf %75, %15 : vector<8x128xf32>
    %77 = arith.negf %76 : vector<8x128xf32>
    %78 = math.exp %77 : vector<8x128xf32>
    %cst_17 = arith.constant 1.000000e+00 : f32
    %79 = vector.broadcast %cst_17 : f32 to vector<8x128xf32>
    %80 = arith.addf %79, %78 : vector<8x128xf32>
    %81 = arith.divf %79, %80 : vector<8x128xf32>
    %82 = vector.extract_strided_slice %81 {offsets = [0, 0], sizes = [8, 32], strides = [1, 1]} : vector<8x128xf32> to vector<8x32xf32>
    %83 = vector.extract_strided_slice %81 {offsets = [0, 32], sizes = [8, 32], strides = [1, 1]} : vector<8x128xf32> to vector<8x32xf32>
    %84 = vector.extract_strided_slice %81 {offsets = [0, 64], sizes = [8, 32], strides = [1, 1]} : vector<8x128xf32> to vector<8x32xf32>
    %85 = arith.mulf %16, %84 : vector<8x32xf32>
    %86 = arith.subf %85, %17 : vector<8x32xf32>
    %87 = vector.extract_strided_slice %81 {offsets = [0, 96], sizes = [8, 32], strides = [1, 1]} : vector<8x128xf32> to vector<8x32xf32>
    %88 = arith.mulf %83, %70 : vector<8x32xf32>
    %89 = arith.mulf %82, %86 : vector<8x32xf32>
    %90 = arith.addf %88, %89 : vector<8x32xf32>
    %91 = math.tanh %90 : vector<8x32xf32>
    %92 = arith.mulf %87, %91 : vector<8x32xf32>
    %cst_18 = arith.constant dense<0.000000e+00> : vector<8x128xf32>
    %93 = tpu.matmul %92, %0, %cst_18 {dimension_numbers = #tpu.dot_dimension_numbers<[1], [0], [0], [1], [0, 0, 1, 1], [], []>} : vector<8x32xf32>, vector<32x128xf32>, vector<8x128xf32> -> vector<8x128xf32>
    %94 = vector.extract_strided_slice %6 {offsets = [32, 0], sizes = [8, 128], strides = [1, 1]} : vector<64x128xf32> to vector<8x128xf32>
    %95 = arith.addf %93, %94 : vector<8x128xf32>
    %96 = arith.mulf %95, %15 : vector<8x128xf32>
    %97 = arith.negf %96 : vector<8x128xf32>
    %98 = math.exp %97 : vector<8x128xf32>
    %cst_19 = arith.constant 1.000000e+00 : f32
    %99 = vector.broadcast %cst_19 : f32 to vector<8x128xf32>
    %100 = arith.addf %99, %98 : vector<8x128xf32>
    %101 = arith.divf %99, %100 : vector<8x128xf32>
    %102 = vector.extract_strided_slice %101 {offsets = [0, 0], sizes = [8, 32], strides = [1, 1]} : vector<8x128xf32> to vector<8x32xf32>
    %103 = vector.extract_strided_slice %101 {offsets = [0, 32], sizes = [8, 32], strides = [1, 1]} : vector<8x128xf32> to vector<8x32xf32>
    %104 = vector.extract_strided_slice %101 {offsets = [0, 64], sizes = [8, 32], strides = [1, 1]} : vector<8x128xf32> to vector<8x32xf32>
    %105 = arith.mulf %16, %104 : vector<8x32xf32>
    %106 = arith.subf %105, %17 : vector<8x32xf32>
    %107 = vector.extract_strided_slice %101 {offsets = [0, 96], sizes = [8, 32], strides = [1, 1]} : vector<8x128xf32> to vector<8x32xf32>
    %108 = arith.mulf %103, %90 : vector<8x32xf32>
    %109 = arith.mulf %102, %106 : vector<8x32xf32>
    %110 = arith.addf %108, %109 : vector<8x32xf32>
    %111 = math.tanh %110 : vector<8x32xf32>
    %112 = arith.mulf %107, %111 : vector<8x32xf32>
    %cst_20 = arith.constant dense<0.000000e+00> : vector<8x128xf32>
    %113 = tpu.matmul %112, %0, %cst_20 {dimension_numbers = #tpu.dot_dimension_numbers<[1], [0], [0], [1], [0, 0, 1, 1], [], []>} : vector<8x32xf32>, vector<32x128xf32>, vector<8x128xf32> -> vector<8x128xf32>
    %114 = vector.extract_strided_slice %6 {offsets = [40, 0], sizes = [8, 128], strides = [1, 1]} : vector<64x128xf32> to vector<8x128xf32>
    %115 = arith.addf %113, %114 : vector<8x128xf32>
    %116 = arith.mulf %115, %15 : vector<8x128xf32>
    %117 = arith.negf %116 : vector<8x128xf32>
    %118 = math.exp %117 : vector<8x128xf32>
    %cst_21 = arith.constant 1.000000e+00 : f32
    %119 = vector.broadcast %cst_21 : f32 to vector<8x128xf32>
    %120 = arith.addf %119, %118 : vector<8x128xf32>
    %121 = arith.divf %119, %120 : vector<8x128xf32>
    %122 = vector.extract_strided_slice %121 {offsets = [0, 0], sizes = [8, 32], strides = [1, 1]} : vector<8x128xf32> to vector<8x32xf32>
    %123 = vector.extract_strided_slice %121 {offsets = [0, 32], sizes = [8, 32], strides = [1, 1]} : vector<8x128xf32> to vector<8x32xf32>
    %124 = vector.extract_strided_slice %121 {offsets = [0, 64], sizes = [8, 32], strides = [1, 1]} : vector<8x128xf32> to vector<8x32xf32>
    %125 = arith.mulf %16, %124 : vector<8x32xf32>
    %126 = arith.subf %125, %17 : vector<8x32xf32>
    %127 = vector.extract_strided_slice %121 {offsets = [0, 96], sizes = [8, 32], strides = [1, 1]} : vector<8x128xf32> to vector<8x32xf32>
    %128 = arith.mulf %123, %110 : vector<8x32xf32>
    %129 = arith.mulf %122, %126 : vector<8x32xf32>
    %130 = arith.addf %128, %129 : vector<8x32xf32>
    %131 = math.tanh %130 : vector<8x32xf32>
    %132 = arith.mulf %127, %131 : vector<8x32xf32>
    %cst_22 = arith.constant dense<0.000000e+00> : vector<8x128xf32>
    %133 = tpu.matmul %132, %0, %cst_22 {dimension_numbers = #tpu.dot_dimension_numbers<[1], [0], [0], [1], [0, 0, 1, 1], [], []>} : vector<8x32xf32>, vector<32x128xf32>, vector<8x128xf32> -> vector<8x128xf32>
    %134 = vector.extract_strided_slice %6 {offsets = [48, 0], sizes = [8, 128], strides = [1, 1]} : vector<64x128xf32> to vector<8x128xf32>
    %135 = arith.addf %133, %134 : vector<8x128xf32>
    %136 = arith.mulf %135, %15 : vector<8x128xf32>
    %137 = arith.negf %136 : vector<8x128xf32>
    %138 = math.exp %137 : vector<8x128xf32>
    %cst_23 = arith.constant 1.000000e+00 : f32
    %139 = vector.broadcast %cst_23 : f32 to vector<8x128xf32>
    %140 = arith.addf %139, %138 : vector<8x128xf32>
    %141 = arith.divf %139, %140 : vector<8x128xf32>
    %142 = vector.extract_strided_slice %141 {offsets = [0, 0], sizes = [8, 32], strides = [1, 1]} : vector<8x128xf32> to vector<8x32xf32>
    %143 = vector.extract_strided_slice %141 {offsets = [0, 32], sizes = [8, 32], strides = [1, 1]} : vector<8x128xf32> to vector<8x32xf32>
    %144 = vector.extract_strided_slice %141 {offsets = [0, 64], sizes = [8, 32], strides = [1, 1]} : vector<8x128xf32> to vector<8x32xf32>
    %145 = arith.mulf %16, %144 : vector<8x32xf32>
    %146 = arith.subf %145, %17 : vector<8x32xf32>
    %147 = vector.extract_strided_slice %141 {offsets = [0, 96], sizes = [8, 32], strides = [1, 1]} : vector<8x128xf32> to vector<8x32xf32>
    %148 = arith.mulf %143, %130 : vector<8x32xf32>
    %149 = arith.mulf %142, %146 : vector<8x32xf32>
    %150 = arith.addf %148, %149 : vector<8x32xf32>
    %151 = math.tanh %150 : vector<8x32xf32>
    %152 = arith.mulf %147, %151 : vector<8x32xf32>
    %cst_24 = arith.constant dense<0.000000e+00> : vector<8x128xf32>
    %153 = tpu.matmul %152, %0, %cst_24 {dimension_numbers = #tpu.dot_dimension_numbers<[1], [0], [0], [1], [0, 0, 1, 1], [], []>} : vector<8x32xf32>, vector<32x128xf32>, vector<8x128xf32> -> vector<8x128xf32>
    %154 = vector.extract_strided_slice %6 {offsets = [56, 0], sizes = [8, 128], strides = [1, 1]} : vector<64x128xf32> to vector<8x128xf32>
    %155 = arith.addf %153, %154 : vector<8x128xf32>
    %156 = arith.mulf %155, %15 : vector<8x128xf32>
    %157 = arith.negf %156 : vector<8x128xf32>
    %158 = math.exp %157 : vector<8x128xf32>
    %cst_25 = arith.constant 1.000000e+00 : f32
    %159 = vector.broadcast %cst_25 : f32 to vector<8x128xf32>
    %160 = arith.addf %159, %158 : vector<8x128xf32>
    %161 = arith.divf %159, %160 : vector<8x128xf32>
    %162 = vector.extract_strided_slice %161 {offsets = [0, 0], sizes = [8, 32], strides = [1, 1]} : vector<8x128xf32> to vector<8x32xf32>
    %163 = vector.extract_strided_slice %161 {offsets = [0, 32], sizes = [8, 32], strides = [1, 1]} : vector<8x128xf32> to vector<8x32xf32>
    %164 = vector.extract_strided_slice %161 {offsets = [0, 64], sizes = [8, 32], strides = [1, 1]} : vector<8x128xf32> to vector<8x32xf32>
    %165 = arith.mulf %16, %164 : vector<8x32xf32>
    %166 = arith.subf %165, %17 : vector<8x32xf32>
    %167 = vector.extract_strided_slice %161 {offsets = [0, 96], sizes = [8, 32], strides = [1, 1]} : vector<8x128xf32> to vector<8x32xf32>
    %168 = arith.mulf %163, %150 : vector<8x32xf32>
    %169 = arith.mulf %162, %166 : vector<8x32xf32>
    %170 = arith.addf %168, %169 : vector<8x32xf32>
    %171 = math.tanh %170 : vector<8x32xf32>
    %172 = arith.mulf %167, %171 : vector<8x32xf32>
    %c0_26 = arith.constant 0 : index
    %c0_27 = arith.constant 0 : index
    %173 = vector.load %arg4[%c0_26, %c0_27] : memref<1x32xf32, #tpu.memory_space<vmem>>, vector<1x32xf32>
    %174 = vector.broadcast %173 : vector<1x32xf32> to vector<8x32xf32>
    %175 = arith.mulf %172, %174 : vector<8x32xf32>
    %cst_28 = arith.constant dense<0.000000e+00> : vector<8xf32>
    %176 = vector.multi_reduction <add>, %175, %cst_28 [1] : vector<8x32xf32> to vector<8xf32>
    %177 = vector.shape_cast %176 : vector<8xf32> to vector<8x1xf32>
    %c0_29 = arith.constant 0 : index
    %c0_30 = arith.constant 0 : index
    %178 = vector.load %arg5[%c0_29, %c0_30] : memref<1x1xf32, #tpu.memory_space<vmem>>, vector<1x1xf32>
    %179 = vector.broadcast %178 : vector<1x1xf32> to vector<8x1xf32>
    %180 = arith.addf %177, %179 : vector<8x1xf32>
    %c0_31 = arith.constant 0 : index
    %c0_32 = arith.constant 0 : index
    %181 = vector.load %arg6[%c0_31, %c0_32] : memref<8x1xf32, #tpu.memory_space<vmem>>, vector<8x1xf32>
    tpu.vector_store %arg6[%c0_31, %c0_32], %180 {strides = array<i32>} : memref<8x1xf32, #tpu.memory_space<vmem>>, vector<8x1xf32>,
    return
  }
}

</mosaic_0001>

<bundles_post_ra>
// kernel: tpu_custom_call.1
= control target key start
LH: loop header
LB: loop body
LE: loop exit
PB: predicated region body
PF: predicated region fallthrough
CT: control target
= control target key end

     0   :  { %vm70_vm0 = vcmask 1041408   ;;  %vm45_vm1 = vcmask 15360   ;;  %v179_v3 = vlaneseq  ;;  %v1215_v8 = vmov 1.0   ;;  %s1216_s28 = smov 64   ;;  %s1221_s12 = smov 32   ;;  %s1432_s1 = inlined_call_operand.vmem [shape: f32[2,128], index: 1, kind: input, shape index: {}]   ;;  %s1433_s0 = inlined_call_operand.vmem [shape: f32[64,2], index: 0, kind: input, shape index: {}]   ;;  %s1434_s3 = inlined_call_operand.vmem [shape: f32[1,128], index: 3, kind: input, shape index: {}]   ;;  %s1435_s2 = inlined_call_operand.vmem [shape: f32[32,128], index: 2, kind: input, shape index: {}]   ;;  %s1436_s4 = inlined_call_operand.vmem [shape: f32[1,32], index: 4, kind: input, shape index: {}]   ;;  %s1437_s5 = inlined_call_operand.<no memory space> [shape: f32[1,1], index: 5, kind: input, shape index: {}]   ;;  %s1438_s6 = inlined_call_operand.vmem [shape: f32[8,1], index: 6, kind: output, shape index: {}]  }
   0x1   :  { %v37_v0 = vld [vmem:[%s1432_s1] sm:$0x3]  ;;  %v30_v2 = vld [vmem:[%s1433_s0 + $0x8] sm:$0xff]  ;;  %v1217_v20 = vmov 0.0|0.0   ;;  %v27_v23 = vld [vmem:[%s1435_s2 + $0x10] sm:$0xff]  ;;  %vm1218_vm5 = vmmov 0  }
   0x2   :  { %v29_v1 = vld [vmem:[%s1433_s0] sm:$0xff]  ;;  %1027 = vmatprep.subr.msk.mxu0 %vm70_vm0, %v37_v0  ;;  %v180_v4 = vand.u32 127, %v179_v3  ;;  %1118 = vmatprep.subr.bf16.mxu1 %v1217_v20  ;;  %v26_v22 = vld [vmem:[%s1435_s2 + $0x8] sm:$0xff]  ;;  %v1219_v24 = vmov 0.0   ;;  %v28_v26 = vld [vmem:[%s1435_s2 + $0x18] sm:$0xff]  ;;  %vm208_vm6 = vcmask 261120  }
   0x3   :  { %1029 = vmatprep.mubr.msk.f32.mxu0 %vm45_vm1, %v29_v1  ;;  %1028 = vmatpush3.msk.msra.mxu0 %vm70_vm0, %v37_v0  ;;  %v1271_v5 = vld [vmem:[%s1434_s3] ss:$0 sm:$0xff]  ;;  %v1297_v27 = vpack.c.bf16 %v28_v26, %v27_v23  ;;  %v31_v49 = vld [vmem:[%s1433_s0 + $0x10] sm:$0xff]  ;;  %v32_v50 = vld [vmem:[%s1433_s0 + $0x18] sm:$0xff]  ;;  %vm942_vm7 = vcmask 7168  }
   0x4   :  { %1030 = vmatmul.mubr.msk.f32.vlgmr.msra.gmra.mrb[0].mxu0 %vm45_vm1, %v30_v2  ;;  %vm181_vm2 = vcmp.ge.s32.totalorder %v180_v4, 64  ;;  %vm182_vm3 = vcmp.lt.s32.totalorder %v180_v4, 96  ;;  %v25_v21 = vld [vmem:[%s1435_s2] sm:$0xff]  ;;  %1049 = vmatprep.mubr.msk.f32.mxu1 %vm1218_vm5, %v1219_v24  ;;  %s1220_s2 = smov 96  }
   0x5   :  { %vm183_vm4 = vmand %vm181_vm2, %vm182_vm3  ;;  %v1290_v25 = vpack.c.bf16 %v26_v22, %v25_v21  ;;  %1130 = vmatprep.subr.bf16.mxu0 %v1217_v20  ;;  %1032 = vmatprep.mubr.msk.f32.mxu0 %vm45_vm1, %v31_v49 }
   0x6   :  { %v1273_v9 = vsel %vm183_vm4, 2.0, %v1215_v8 }
   0x7   :  { %1120 = vmatpush3.bf16.msra.mxu1 %v1290_v25  ;;  %1132 = vmatpush3.bf16.msra.mxu0 %v1290_v25 }
   0x8   :  { %1121 = vmatprep.subr.bf16.mxu1 %v1217_v20  ;;  %1133 = vmatprep.subr.bf16.mxu0 %v1217_v20 }
   0x9   :  { %1033 = vmatmul.mubr.msk.f32.gmra.mrb[2].mxu0 %vm45_vm1, %v32_v50 }
   0xb   :  { %1123 = vmatpush3.bf16.msra.mxu1 %v1297_v27  ;;  %1135 = vmatpush3.bf16.msra.mxu0 %v1297_v27 }
   0xc   :  { %1124 = vmatprep.subr.bf16.mxu1 %v1217_v20  ;;  %1142 = vmatprep.subr.bf16.mxu0 %v1217_v20 }
  0xd7   :  { %v1031_v6 = vpop.f32.mrb[0].mxu0 }
  0xd8   :  { %v140_v7 = vpop.f32.mrb[1].mxu0  ;;  %v146_v32 = vadd.f32 %v1031_v6, %v1271_v5 }
  0xd9   :  { %v141_v10 = vadd.f32 %v1271_v5, %v140_v7 }
  0xdb   :  { %v185_v11 = vmul.f32 %v1273_v9, %v141_v10 }
  0xdc   :  { %v1034_v54 = vpop.f32.mrb[2].mxu0 }
  0xdd   :  { %v958_v12 = vmul.f32 -1.442695, %v185_v11  ;;  %v150_v55 = vpop.f32.mrb[3].mxu0  ;;  %v33_v11 = vld [vmem:[%s1433_s0 + $0x20] sm:$0xff]  ;;  %v156_v26 = vadd.f32 %v1034_v54, %v1271_v5 }
  0xde   :  { %v151_v57 = vadd.f32 %v1271_v5, %v150_v55  ;;  %1035 = vmatprep.mubr.msk.f32.mxu0 %vm45_vm1, %v33_v11 }
  0xdf   :  { %1167 = vpow2.f32 %v958_v12  ;;  %v34_v12 = vld [vmem:[%s1433_s0 + $0x28] sm:$0xff] }
  0xe0   :  { %1036 = vmatmul.mubr.msk.f32.gmra.mrb[4].mxu0 %vm45_vm1, %v34_v12 }
  0xe9   :  { %v1168_v13 = vpop.eup %1167 }
  0xea   :  { %v189_v14 = vadd.f32 1.0, %v1168_v13  ;;  %v35_v13 = vld [vmem:[%s1433_s0 + $0x30] sm:$0xff] }
  0xeb   :  { %1038 = vmatprep.mubr.msk.f32.mxu0 %vm45_vm1, %v35_v13 }
  0xec   :  { %1169 = vrcp.f32 %v189_v14  ;;  %v36_v14 = vld [vmem:[%s1433_s0 + $0x38] sm:$0xff] }
  0xed   :  { %1039 = vmatmul.mubr.msk.f32.gmra.mrb[6].mxu0 %vm45_vm1, %v36_v14 }
  0xee   :  { %1071 = vmatprep.mubr.msk.f32.mxu0 %vm1218_vm5, %v1219_v24 }
  0xf6   :  { %v1170_v15 = vpop.eup %1169 }
  0xf7   :  { %v192_v16 = vmul.f32 2.0, %v1170_v15 }
  0xf9   :  { %v959_v17 = vadd.f32 -1.0, %v192_v16 }
  0xfb   :  { %195 = vrot.lane.b32.xlu0 %v959_v17, %s1216_s28 }
 0x16d   :  { %v196_v18 = vpop.permute.xlu0 %195 }
 0x16e   :  { %v198_v19 = vmul.f32 %v1170_v15, %v196_v18 }
 0x170   :  { %1171 = vtanh.f32 %v198_v19 }
 0x17a   :  { %v1172_v28 = vpop.eup %1171 }
 0x17b   :  { %201 = vrot.lane.b32.xlu0 %v1172_v28, %s1220_s2 }
 0x17f   :  { %291 = vrot.lane.b32.xlu0 %v198_v19, %s1221_s12 }
 0x1b3   :  { %v1361_v18 = vpop.f32.mrb[4].mxu0 }
 0x1b4   :  { %v160_v19 = vpop.f32.mrb[5].mxu0 }
 0x1c0   :  { %v1363_v21 = vpop.f32.mrb[6].mxu0 }
 0x1c1   :  { %v1365_v22 = vpop.f32.mrb[7].mxu0 }
 0x1ed   :  { %v202_v29 = vpop.permute.xlu0 %201 }
 0x1ee   :  { %v204_v30 = vmul.f32 %v1170_v15, %v202_v29 }
 0x1f0   :  { %206 = vrot.lane.b32.xlu1 %v204_v30, %s1221_s12 }
 0x1f1   :  { %v292_v45 = vpop.permute.xlu0 %291 }
 0x262   :  { %v207_v31 = vpop.permute.xlu1 %206 }
 0x263   :  { %1050 = vmatmul.mubr.msk.f32.vlgmr.msra.gmra.mrb[0].mxu1 %vm208_vm6, %v207_v31 }
 0x264   :  { %1126 = vmatpush3.bf16.msra.mxu1 %v1290_v25  ;;  %1060 = vmatprep.mubr.msk.f32.mxu1 %vm1218_vm5, %v1219_v24 }
 0x265   :  { %1127 = vmatprep.subr.bf16.mxu1 %v1217_v20 }
 0x268   :  { %1129 = vmatpush3.bf16.msra.mxu1 %v1297_v27 }
 0x269   :  { %1136 = vmatprep.subr.bf16.mxu1 %v1217_v20 }
 0x336   :  { %v277_v33 = vpop.f32.mrb[0].mxu1 }
 0x337   :  { %v278_v34 = vadd.f32 %v277_v33, %v146_v32  ;;  %v1051_v35 = vpop.f32.mrb[1].mxu1 }
 0x339   :  { %v281_v36 = vmul.f32 %v278_v34, %v1273_v9 }
 0x33b   :  { %v961_v37 = vmul.f32 -1.442695, %v281_v36 }
 0x33d   :  { %1173 = vpow2.f32 %v961_v37 }
 0x347   :  { %v1174_v38 = vpop.eup %1173 }
 0x348   :  { %v285_v39 = vadd.f32 1.0, %v1174_v38 }
 0x34a   :  { %1175 = vrcp.f32 %v285_v39 }
 0x354   :  { %v1176_v40 = vpop.eup %1175 }
 0x355   :  { %v288_v41 = vmul.f32 2.0, %v1176_v40  ;;  %v294_v46 = vmul.f32 %v1176_v40, %v292_v45 }
 0x357   :  { %v962_v42 = vadd.f32 -1.0, %v288_v41 }
 0x359   :  { %296 = vrot.lane.b32.xlu1 %v962_v42, %s1216_s28 }
 0x3cb   :  { %v297_v43 = vpop.permute.xlu1 %296 }
 0x3cc   :  { %v299_v44 = vmul.f32 %v1176_v40, %v297_v43 }
 0x3ce   :  { %301 = vrot.lane.b32.xlu1 %v299_v44, %s1221_s12 }
 0x440   :  { %v302_v47 = vpop.permute.xlu1 %301 }
 0x441   :  { %v304_v48 = vadd.f32 %v302_v47, %v294_v46  ;;  %v161_v47 = vadd.f32 %v1271_v5, %v160_v19 }
 0x443   :  { %1177 = vtanh.f32 %v304_v48 }
 0x44d   :  { %v1178_v51 = vpop.eup %1177 }
 0x44e   :  { %307 = vrot.lane.b32.xlu0 %v1178_v51, %s1216_s28 }
 0x4c0   :  { %v308_v52 = vpop.permute.xlu0 %307 }
 0x4c1   :  { %v310_v53 = vmul.f32 %v1176_v40, %v308_v52 }
 0x4c3   :  { %312 = vrot.lane.b32.xlu1 %v310_v53, %s1221_s12 }
 0x535   :  { %v313_v56 = vpop.permute.xlu1 %312 }
 0x536   :  { %1061 = vmatmul.mubr.msk.f32.vlgmr.msra.gmra.mrb[2].mxu1 %vm208_vm6, %v313_v56 }
 0x537   :  { %1138 = vmatpush3.bf16.msra.mxu1 %v1290_v25  ;;  %1082 = vmatprep.mubr.msk.f32.mxu1 %vm1218_vm5, %v1219_v24 }
 0x538   :  { %1139 = vmatprep.subr.bf16.mxu1 %v1217_v20 }
 0x53b   :  { %1141 = vmatpush3.bf16.msra.mxu1 %v1297_v27 }
 0x53c   :  { %1148 = vmatprep.subr.bf16.mxu1 %v1217_v20 }
 0x609   :  { %v382_v58 = vpop.f32.mrb[2].mxu1 }
 0x60a   :  { %v383_v59 = vadd.f32 %v382_v58, %v151_v57  ;;  %v1062_v60 = vpop.f32.mrb[3].mxu1 }
 0x60c   :  { %v386_v61 = vmul.f32 %v383_v59, %v1273_v9 }
 0x60e   :  { %v964_v62 = vmul.f32 -1.442695, %v386_v61 }
 0x610   :  { %1179 = vpow2.f32 %v964_v62 }
 0x61a   :  { %v1180_v63 = vpop.eup %1179 }
 0x61b   :  { %v390_v0 = vadd.f32 1.0, %v1180_v63 }
 0x61d   :  { %1181 = vrcp.f32 %v390_v0 }
 0x627   :  { %v1182_v1 = vpop.eup %1181 }
 0x628   :  { %v393_v2 = vmul.f32 2.0, %v1182_v1  ;;  %v395_v7 = vmul.f32 %v1182_v1, %v304_v48 }
 0x62a   :  { %v965_v3 = vadd.f32 -1.0, %v393_v2 }
 0x62c   :  { %397 = vrot.lane.b32.xlu0 %v965_v3, %s1216_s28  ;;  %v166_v3 = vadd.f32 %v1361_v18, %v1271_v5 }
 0x69e   :  { %v398_v4 = vpop.permute.xlu0 %397 }
 0x69f   :  { %v400_v6 = vmul.f32 %v1182_v1, %v398_v4 }
 0x6a1   :  { %402 = vrot.lane.b32.xlu1 %v400_v6, %s1221_s12 }
 0x713   :  { %v403_v8 = vpop.permute.xlu1 %402 }
 0x714   :  { %v405_v10 = vadd.f32 %v403_v8, %v395_v7 }
 0x716   :  { %1183 = vtanh.f32 %v405_v10 }
 0x720   :  { %v1184_v15 = vpop.eup %1183 }
 0x721   :  { %408 = vrot.lane.b32.xlu0 %v1184_v15, %s1216_s28 }
 0x793   :  { %v409_v16 = vpop.permute.xlu0 %408 }
 0x794   :  { %v411_v17 = vmul.f32 %v1182_v1, %v409_v16 }
 0x796   :  { %413 = vrot.lane.b32.xlu1 %v411_v17, %s1221_s12 }
 0x808   :  { %v414_v23 = vpop.permute.xlu1 %413 }
 0x809   :  { %1072 = vmatmul.mubr.msk.f32.vlgmr.msra.gmra.mrb[8].mxu0 %vm208_vm6, %v414_v23 }
 0x80a   :  { %1144 = vmatpush3.bf16.msra.mxu0 %v1290_v25  ;;  %1093 = vmatprep.mubr.msk.f32.mxu0 %vm1218_vm5, %v1219_v24 }
 0x80b   :  { %1145 = vmatprep.subr.bf16.mxu0 %v1217_v20 }
 0x80e   :  { %1147 = vmatpush3.bf16.msra.mxu0 %v1297_v27 }
 0x80f   :  { %1154 = vmatprep.subr.bf16.mxu0 %v1217_v20 }
 0x8dc   :  { %v483_v28 = vpop.f32.mrb[8].mxu0 }
 0x8dd   :  { %v484_v29 = vadd.f32 %v483_v28, %v156_v26  ;;  %v1073_v30 = vpop.f32.mrb[9].mxu0  ;;  %v171_v26 = vadd.f32 %v1271_v5, %v1365_v22 }
 0x8df   :  { %v487_v31 = vmul.f32 %v484_v29, %v1273_v9 }
 0x8e1   :  { %v967_v32 = vmul.f32 -1.442695, %v487_v31 }
 0x8e3   :  { %1185 = vpow2.f32 %v967_v32 }
 0x8ed   :  { %v1186_v33 = vpop.eup %1185 }
 0x8ee   :  { %v491_v34 = vadd.f32 1.0, %v1186_v33 }
 0x8f0   :  { %1187 = vrcp.f32 %v491_v34 }
 0x8fa   :  { %v1188_v35 = vpop.eup %1187 }
 0x8fb   :  { %v494_v36 = vmul.f32 2.0, %v1188_v35  ;;  %v496_v40 = vmul.f32 %v1188_v35, %v405_v10 }
 0x8fd   :  { %v968_v37 = vadd.f32 -1.0, %v494_v36 }
 0x8ff   :  { %498 = vrot.lane.b32.xlu0 %v968_v37, %s1216_s28 }
 0x971   :  { %v499_v38 = vpop.permute.xlu0 %498 }
 0x972   :  { %v501_v39 = vmul.f32 %v1188_v35, %v499_v38 }
 0x974   :  { %503 = vrot.lane.b32.xlu1 %v501_v39, %s1221_s12 }
 0x9e6   :  { %v504_v41 = vpop.permute.xlu1 %503 }
 0x9e7   :  { %v506_v42 = vadd.f32 %v504_v41, %v496_v40 }
 0x9e9   :  { %1189 = vtanh.f32 %v506_v42 }
 0x9f3   :  { %v1190_v43 = vpop.eup %1189 }
 0x9f4   :  { %509 = vrot.lane.b32.xlu0 %v1190_v43, %s1216_s28 }
 0xa66   :  { %v510_v44 = vpop.permute.xlu0 %509 }
 0xa67   :  { %v512_v45 = vmul.f32 %v1188_v35, %v510_v44 }
 0xa69   :  { %514 = vrot.lane.b32.xlu1 %v512_v45, %s1221_s12 }
 0xadb   :  { %v515_v46 = vpop.permute.xlu1 %514 }
 0xadc   :  { %1083 = vmatmul.mubr.msk.f32.vlgmr.msra.gmra.mrb[4].mxu1 %vm208_vm6, %v515_v46  ;;  %v176_v46 = vadd.f32 %v1363_v21, %v1271_v5  ;;  %v981_v5 = vld [vmem:[%s1436_s4] ss:$0 sm:$0xff] }
 0xadd   :  { %1150 = vmatpush3.bf16.msra.mxu1 %v1290_v25  ;;  %1104 = vmatprep.mubr.msk.f32.mxu1 %vm1218_vm5, %v1219_v24 }
 0xade   :  { %1151 = vmatprep.subr.bf16.mxu1 %v1217_v20 }
 0xae1   :  { %1153 = vmatpush3.bf16.msra.mxu1 %v1297_v27 }
 0xbaf   :  { %v584_v48 = vpop.f32.mrb[4].mxu1 }
 0xbb0   :  { %v585_v49 = vadd.f32 %v584_v48, %v161_v47  ;;  %v1084_v50 = vpop.f32.mrb[5].mxu1 }
 0xbb2   :  { %v588_v51 = vmul.f32 %v585_v49, %v1273_v9 }
 0xbb4   :  { %v970_v52 = vmul.f32 -1.442695, %v588_v51 }
 0xbb6   :  { %1191 = vpow2.f32 %v970_v52 }
 0xbc0   :  { %v1192_v53 = vpop.eup %1191 }
 0xbc1   :  { %v592_v54 = vadd.f32 1.0, %v1192_v53 }
 0xbc3   :  { %1193 = vrcp.f32 %v592_v54 }
 0xbcd   :  { %v1194_v55 = vpop.eup %1193 }
 0xbce   :  { %v595_v56 = vmul.f32 2.0, %v1194_v55  ;;  %v597_v60 = vmul.f32 %v1194_v55, %v506_v42 }
 0xbd0   :  { %v971_v57 = vadd.f32 -1.0, %v595_v56 }
 0xbd2   :  { %599 = vrot.lane.b32.xlu0 %v971_v57, %s1216_s28 }
 0xc44   :  { %v600_v58 = vpop.permute.xlu0 %599 }
 0xc45   :  { %v602_v59 = vmul.f32 %v1194_v55, %v600_v58 }
 0xc47   :  { %604 = vrot.lane.b32.xlu1 %v602_v59, %s1221_s12 }
 0xcb9   :  { %v605_v61 = vpop.permute.xlu1 %604 }
 0xcba   :  { %v607_v62 = vadd.f32 %v605_v61, %v597_v60  ;;  %v11_v61 = vstv %s1437_s5 }
 0xcbb   :  { %12 = vst [vmem:[#allocation2] sm:$0x1] %v11_v61 }
 0xcbc   :  { %1195 = vtanh.f32 %v607_v62 }
 0xcc6   :  { %v1196_v63 = vpop.eup %1195 }
 0xcc7   :  { %610 = vrot.lane.b32.xlu0 %v1196_v63, %s1216_s28 }
 0xd39   :  { %v611_v0 = vpop.permute.xlu0 %610 }
 0xd3a   :  { %v613_v1 = vmul.f32 %v1194_v55, %v611_v0 }
 0xd3c   :  { %615 = vrot.lane.b32.xlu1 %v613_v1, %s1221_s12 }
 0xdae   :  { %v616_v2 = vpop.permute.xlu1 %615 }
 0xdaf   :  { %1094 = vmatmul.mubr.msk.f32.vlgmr.msra.gmra.mrb[10].mxu0 %vm208_vm6, %v616_v2 }
 0xdb0   :  { %1156 = vmatpush3.bf16.msra.mxu0 %v1290_v25  ;;  %1115 = vmatprep.mubr.msk.f32.mxu0 %vm1218_vm5, %v1219_v24 }
 0xdb1   :  { %1157 = vmatprep.subr.bf16.mxu0 %v1217_v20 }
 0xdb4   :  { %1159 = vmatpush3.bf16.msra.mxu0 %v1297_v27 }
 0xe82   :  { %v685_v4 = vpop.f32.mrb[10].mxu0 }
 0xe83   :  { %v686_v6 = vadd.f32 %v685_v4, %v166_v3  ;;  %v1095_v7 = vpop.f32.mrb[11].mxu0  ;;  %v982_v4 = vld [vmem:[#allocation2] ss:$0 sm:$0xff] }
 0xe85   :  { %v689_v8 = vmul.f32 %v686_v6, %v1273_v9 }
 0xe87   :  { %v973_v10 = vmul.f32 -1.442695, %v689_v8 }
 0xe89   :  { %1197 = vpow2.f32 %v973_v10 }
 0xe93   :  { %v1198_v11 = vpop.eup %1197 }
 0xe94   :  { %v693_v12 = vadd.f32 1.0, %v1198_v11 }
 0xe96   :  { %1199 = vrcp.f32 %v693_v12 }
 0xea0   :  { %v1200_v25 = vpop.eup %1199 }
 0xea1   :  { %v696_v13 = vmul.f32 2.0, %v1200_v25  ;;  %v698_v14 = vmul.f32 %v1200_v25, %v607_v62 }
 0xea3   :  { %v974_v24 = vadd.f32 -1.0, %v696_v13 }
 0xea5   :  { %700 = vrot.lane.b32.xlu0 %v974_v24, %s1216_s28 }
 0xf17   :  { %v701_v20 = vpop.permute.xlu0 %700 }
 0xf18   :  { %v703_v27 = vmul.f32 %v1200_v25, %v701_v20 }
 0xf1a   :  { %705 = vrot.lane.b32.xlu1 %v703_v27, %s1221_s12 }
 0xf8c   :  { %v706_v15 = vpop.permute.xlu1 %705 }
 0xf8d   :  { %v708_v16 = vadd.f32 %v706_v15, %v698_v14 }
 0xf8f   :  { %1201 = vtanh.f32 %v708_v16 }
 0xf99   :  { %v1202_v17 = vpop.eup %1201 }
 0xf9a   :  { %711 = vrot.lane.b32.xlu0 %v1202_v17, %s1216_s28 }
0x100c   :  { %v712_v18 = vpop.permute.xlu0 %711 }
0x100d   :  { %v714_v19 = vmul.f32 %v1200_v25, %v712_v18 }
0x100f   :  { %716 = vrot.lane.b32.xlu1 %v714_v19, %s1221_s12 }
0x1081   :  { %v717_v23 = vpop.permute.xlu1 %716 }
0x1082   :  { %1105 = vmatmul.mubr.msk.f32.vlgmr.msra.gmra.mrb[6].mxu1 %vm208_vm6, %v717_v23 }
0x1155   :  { %v786_v28 = vpop.f32.mrb[6].mxu1 }
0x1156   :  { %v787_v29 = vadd.f32 %v786_v28, %v171_v26  ;;  %v1106_v30 = vpop.f32.mrb[7].mxu1 }
0x1158   :  { %v790_v31 = vmul.f32 %v787_v29, %v1273_v9 }
0x115a   :  { %v976_v32 = vmul.f32 -1.442695, %v790_v31 }
0x115c   :  { %1203 = vpow2.f32 %v976_v32 }
0x1166   :  { %v1204_v33 = vpop.eup %1203 }
0x1167   :  { %v794_v34 = vadd.f32 1.0, %v1204_v33 }
0x1169   :  { %1205 = vrcp.f32 %v794_v34 }
0x1173   :  { %v1206_v35 = vpop.eup %1205 }
0x1174   :  { %v797_v36 = vmul.f32 2.0, %v1206_v35  ;;  %v799_v22 = vmul.f32 %v1206_v35, %v708_v16 }
0x1176   :  { %v977_v37 = vadd.f32 -1.0, %v797_v36 }
0x1178   :  { %801 = vrot.lane.b32.xlu0 %v977_v37, %s1216_s28 }
0x11ea   :  { %v802_v38 = vpop.permute.xlu0 %801 }
0x11eb   :  { %v804_v39 = vmul.f32 %v1206_v35, %v802_v38 }
0x11ed   :  { %806 = vrot.lane.b32.xlu1 %v804_v39, %s1221_s12 }
0x125f   :  { %v807_v40 = vpop.permute.xlu1 %806 }
0x1260   :  { %v809_v41 = vadd.f32 %v807_v40, %v799_v22 }
0x1262   :  { %1207 = vtanh.f32 %v809_v41 }
0x126c   :  { %v1208_v42 = vpop.eup %1207 }
0x126d   :  { %812 = vrot.lane.b32.xlu0 %v1208_v42, %s1216_s28 }
0x12df   :  { %v813_v43 = vpop.permute.xlu0 %812 }
0x12e0   :  { %v815_v44 = vmul.f32 %v1206_v35, %v813_v43 }
0x12e2   :  { %817 = vrot.lane.b32.xlu1 %v815_v44, %s1221_s12 }
0x1354   :  { %v818_v45 = vpop.permute.xlu1 %817 }
0x1355   :  { %1116 = vmatmul.mubr.msk.f32.vlgmr.msra.gmra.mrb[12].mxu0 %vm208_vm6, %v818_v45 }
0x1428   :  { %v887_v47 = vpop.f32.mrb[12].mxu0 }
0x1429   :  { %v888_v48 = vadd.f32 %v887_v47, %v176_v46  ;;  %v1117_v49 = vpop.f32.mrb[13].mxu0 }
0x142b   :  { %v891_v50 = vmul.f32 %v888_v48, %v1273_v9 }
0x142d   :  { %v979_v51 = vmul.f32 -1.442695, %v891_v50 }
0x142f   :  { %1209 = vpow2.f32 %v979_v51 }
0x1439   :  { %v1210_v52 = vpop.eup %1209 }
0x143a   :  { %v895_v53 = vadd.f32 1.0, %v1210_v52 }
0x143c   :  { %1211 = vrcp.f32 %v895_v53 }
0x1446   :  { %v1212_v54 = vpop.eup %1211 }
0x1447   :  { %v898_v55 = vmul.f32 2.0, %v1212_v54  ;;  %v900_v9 = vmul.f32 %v1212_v54, %v809_v41 }
0x1449   :  { %v980_v56 = vadd.f32 -1.0, %v898_v55 }
0x144b   :  { %902 = vrot.lane.b32.xlu0 %v980_v56, %s1216_s28 }
0x14bd   :  { %v903_v57 = vpop.permute.xlu0 %902 }
0x14be   :  { %v905_v58 = vmul.f32 %v1212_v54, %v903_v57 }
0x14c0   :  { %907 = vrot.lane.b32.xlu1 %v905_v58, %s1221_s12 }
0x14c4   :  { %923 = vrot.lane.b32.xlu1 %v981_v5, %s1220_s2 }
0x1532   :  { %v908_v21 = vpop.permute.xlu1 %907 }
0x1533   :  { %v910_v59 = vadd.f32 %v908_v21, %v900_v9 }
0x1535   :  { %1213 = vtanh.f32 %v910_v59 }
0x1536   :  { %v924_v63 = vpop.permute.xlu1 %923 }
0x153f   :  { %v1214_v60 = vpop.eup %1213 }
0x1540   :  { %913 = vrot.lane.b32.xlu0 %v1214_v60, %s1216_s28 }
0x15b2   :  { %v914_v62 = vpop.permute.xlu0 %913 }
0x15b3   :  { %v916_v0 = vmul.f32 %v1212_v54, %v914_v62 }
0x15b5   :  { %v926_v1 = vmul.f32 %v924_v63, %v916_v0 }
0x15b7   :  { %928 = vrot.lane.b32.xlu0 %v926_v1, %s1221_s12 }
0x1629   :  { %v929_v2 = vpop.permute.xlu0 %928 }
0x162a   :  { %v931_v3 = vsel %vm208_vm6, %v929_v2, 0.0 }
0x162b   :  { %932 = vadd.xlane.f32.xlu1 %v931_v3 }
0x16b8   :  { %v933_v6 = vpop.xlane.xlu1 %932 }
0x16b9   :  { %v941_v7 = vadd.f32 %v982_v4, %v933_v6 }
0x16bb   :  { %943 = vst.msk [vmem:[%s1438_s6] sm:$0xff] %vm942_vm7, %v941_v7 }

</bundles_post_ra>
